<compile_context>
chip_gen: v6e
topology: v6e:2x2x1
jax: 0.10.0
libtpu: 0.0.40
codegen_flags: <defaults>
</compile_context>

<pallas_src>
import functools

import jax
import jax.numpy as jnp
import numpy as np
from jax.experimental import pallas as pl
from jax.experimental.pallas import tpu as pltpu

EPS = 1e-5

# Tiling constants (tuned for the small demo shapes; for production shapes
# raise TM to 512-1024 on v5e/v6e and re-derive against v7x's 64 MiB VMEM).
TM = 256            # output rows (N * spatial) per tile
TK = 128            # contraction (tap * Cin) tile, multiple of the 128 lanes
LANE = 128          # channel padding -> lane-dense MXU tiles & unmasked stores
VMEM_LIMIT = 56 * 1024 * 1024   # past the 16/32 MiB scoped defaults


def _round_up(x, m):
    return (x + m - 1) // m * m


def _pad2(a, rows, cols):
    return jnp.pad(a, ((0, rows - a.shape[0]), (0, cols - a.shape[1])))


def _compiler_params(sem):
    return pltpu.CompilerParams(dimension_semantics=sem,
                                vmem_limit_bytes=VMEM_LIMIT)


# ----------------------------------------------------------------------------
# Pass 1 kernels: tiled matmul (conv as GEMM) + per-tile BN statistics.
# ----------------------------------------------------------------------------
def _mm_stats_kernel(p_ref, w_ref, h_ref, st_ref, acc_ref):
    k = pl.program_id(1)

    @pl.when(k == 0)
    def _init():
        acc_ref[...] = jnp.zeros_like(acc_ref)

    acc_ref[...] += jnp.dot(p_ref[...], w_ref[...],
                            preferred_element_type=jnp.float32)

    @pl.when(k == pl.num_programs(1) - 1)
    def _finalize():
        h = acc_ref[...]
        cp = h.shape[1]
        h_ref[...] = h
        s = jnp.sum(h, axis=0, keepdims=True)
        ss = jnp.sum(h * h, axis=0, keepdims=True)
        st = jnp.concatenate([s, ss, jnp.zeros((6, cp), jnp.float32)], axis=0)
        st_ref[...] = st[None, :, :]


def _mm_stats_proj_kernel(p_ref, w_ref, xs_ref, ws_ref, h_ref, st_ref, acc_ref):
    # Same as above, additionally accumulates BN statistics of the 1x1-conv
    # shortcut (xs @ ws) so the shortcut BN can be applied in the epilogue
    # without ever writing the shortcut activation to HBM.
    k = pl.program_id(1)

    @pl.when(k == 0)
    def _init():
        acc_ref[...] = jnp.zeros_like(acc_ref)

    acc_ref[...] += jnp.dot(p_ref[...], w_ref[...],
                            preferred_element_type=jnp.float32)

    @pl.when(k == pl.num_programs(1) - 1)
    def _finalize():
        h = acc_ref[...]
        cp = h.shape[1]
        h_ref[...] = h
        hs = jnp.dot(xs_ref[...], ws_ref[...],
                     preferred_element_type=jnp.float32)
        s = jnp.sum(h, axis=0, keepdims=True)
        ss = jnp.sum(h * h, axis=0, keepdims=True)
        s2 = jnp.sum(hs, axis=0, keepdims=True)
        ss2 = jnp.sum(hs * hs, axis=0, keepdims=True)
        st = jnp.concatenate([s, ss, s2, ss2,
                              jnp.zeros((4, cp), jnp.float32)], axis=0)
        st_ref[...] = st[None, :, :]


# ----------------------------------------------------------------------------
# Pass 2 kernels: finalize BN stats + normalize + (residual) + ReLU, tiled.
# ----------------------------------------------------------------------------
def _bn(h, s, ss, count, g, b):
    mean = s / count
    var = jnp.maximum(ss / count - mean * mean, 0.0)
    return (h - mean) * (jax.lax.rsqrt(var + EPS) * g) + b


def _bn_relu_kernel(h_ref, st_ref, g_ref, b_ref, o_ref, *, count):
    st = jnp.sum(st_ref[...], axis=0)               # reduce per-tile partials
    y = _bn(h_ref[...], st[0:1, :], st[1:2, :], count, g_ref[...], b_ref[...])
    o_ref[...] = jnp.maximum(y, 0.0).astype(o_ref.dtype)


def _bn_add_relu_kernel(h_ref, st_ref, g_ref, b_ref, r_ref, o_ref, *, count):
    st = jnp.sum(st_ref[...], axis=0)
    y = _bn(h_ref[...], st[0:1, :], st[1:2, :], count, g_ref[...], b_ref[...])
    o_ref[...] = jnp.maximum(y + r_ref[...], 0.0).astype(o_ref.dtype)


def _bn_proj_add_relu_kernel(h_ref, st_ref, g_ref, b_ref,
                             xs_ref, ws_ref, gs_ref, bs_ref, o_ref, *, count):
    st = jnp.sum(st_ref[...], axis=0)
    y = _bn(h_ref[...], st[0:1, :], st[1:2, :], count, g_ref[...], b_ref[...])
    # Recompute the tiny 1x1-conv shortcut per tile (cheaper than an HBM
    # round trip of its (M, C) activation).
    hs = jnp.dot(xs_ref[...], ws_ref[...], preferred_element_type=jnp.float32)
    ys = _bn(hs, st[2:3, :], st[3:4, :], count, gs_ref[...], bs_ref[...])
    o_ref[...] = jnp.maximum(y + ys, 0.0).astype(o_ref.dtype)


# ----------------------------------------------------------------------------
# pallas_call wrappers.
# ----------------------------------------------------------------------------
def conv_matmul_stats(patches, w, shortcut=None):
    """patches: (Mp, Kp) bf16, w: (Kp, Cp) bf16.  Returns H (Mp, Cp) f32 and
    per-M-tile stats (num_m, 8, Cp) with rows [sum(H), sum(H^2), sum(Hs),
    sum(Hs^2), 0...] (shortcut rows only if `shortcut` is given)."""
    mp, kp = patches.shape
    cp = w.shape[1]
    nm, nk = mp // TM, kp // TK
    out_shape = (jax.ShapeDtypeStruct((mp, cp), jnp.float32),
                 jax.ShapeDtypeStruct((nm, 8, cp), jnp.float32))
    out_specs = (pl.BlockSpec((TM, cp), lambda m, k: (m, 0)),
                 pl.BlockSpec((1, 8, cp), lambda m, k: (m, 0, 0)))
    flops = 2 * mp * kp * cp
    bytes_acc = (patches.size * 2 + w.size * 2 + mp * cp * 4 + nm * 8 * cp * 4)
    if shortcut is None:
        kern = _mm_stats_kernel
        in_specs = [pl.BlockSpec((TM, TK), lambda m, k: (m, k)),
                    pl.BlockSpec((TK, cp), lambda m, k: (k, 0))]
        args = (patches, w)
    else:
        xs, ws = shortcut
        cin_p = xs.shape[1]
        kern = _mm_stats_proj_kernel
        in_specs = [pl.BlockSpec((TM, TK), lambda m, k: (m, k)),
                    pl.BlockSpec((TK, cp), lambda m, k: (k, 0)),
                    pl.BlockSpec((TM, cin_p), lambda m, k: (m, 0)),
                    pl.BlockSpec((cin_p, cp), lambda m, k: (0, 0))]
        args = (patches, w, xs, ws)
        flops += 2 * mp * cin_p * cp
        bytes_acc += xs.size * 2 + ws.size * 2
    return pl.pallas_call(
        kern,
        out_shape=out_shape,
        grid_spec=pltpu.PrefetchScalarGridSpec(
            num_scalar_prefetch=0,
            grid=(nm, nk),
            in_specs=in_specs,
            out_specs=out_specs,
            scratch_shapes=[pltpu.VMEM((TM, cp), jnp.float32)]),
        compiler_params=_compiler_params(("parallel", "arbitrary")),
        cost_estimate=pl.CostEstimate(flops=int(flops), transcendentals=0,
                                      bytes_accessed=int(bytes_acc)),
    )(*args)


def bn_epilogue(h, stats, gamma, beta, count, *, residual=None, proj=None,
                out_dtype=jnp.float32):
    """Tiled relu(bn(h) [+ residual | + bn(xs @ ws)]) using global BN stats."""
    mp, cp = h.shape
    nm = mp // TM
    h_spec = pl.BlockSpec((TM, cp), lambda m: (m, 0))
    st_spec = pl.BlockSpec((nm, 8, cp), lambda m: (0, 0, 0))
    vec_spec = pl.BlockSpec((1, cp), lambda m: (0, 0))
    in_specs = [h_spec, st_spec, vec_spec, vec_spec]
    args = [h, stats, gamma, beta]
    flops = 10 * mp * cp
    if proj is not None:
        xs, ws, gs, bs = proj
        cin_p = xs.shape[1]
        kern = functools.partial(_bn_proj_add_relu_kernel, count=float(count))
        in_specs += [pl.BlockSpec((TM, cin_p), lambda m: (m, 0)),
                     pl.BlockSpec((cin_p, cp), lambda m: (0, 0)),
                     vec_spec, vec_spec]
        args += [xs, ws, gs, bs]
        flops += 2 * mp * cin_p * cp
    elif residual is not None:
        kern = functools.partial(_bn_add_relu_kernel, count=float(count))
        in_specs += [h_spec]
        args += [residual]
    else:
        kern = functools.partial(_bn_relu_kernel, count=float(count))
    bytes_acc = sum(int(a.size) * a.dtype.itemsize for a in args)
    bytes_acc += mp * cp * jnp.dtype(out_dtype).itemsize
    return pl.pallas_call(
        kern,
        out_shape=jax.ShapeDtypeStruct((mp, cp), out_dtype),
        grid_spec=pltpu.PrefetchScalarGridSpec(
            num_scalar_prefetch=0,
            grid=(nm,),
            in_specs=in_specs,
            out_specs=pl.BlockSpec((TM, cp), lambda m: (m, 0))),
        compiler_params=_compiler_params(("parallel",)),
        cost_estimate=pl.CostEstimate(flops=int(flops), transcendentals=int(cp),
                                      bytes_accessed=int(bytes_acc)),
    )(*args)


# ----------------------------------------------------------------------------
# Plain-JAX glue: 4-D im2col (channels-last), parameter construction/packing.
# ----------------------------------------------------------------------------
def im2col4d(x, ksize, stride, padding):
    """x: (N, D1, D2, D3, D4, C) -> (M, ksize**4 * C) [tap-major, cin-minor]."""
    n, d1, d2, d3, d4, c = x.shape
    xp = jnp.pad(x, [(0, 0)] + [(padding, padding)] * 4 + [(0, 0)])
    out_dims = [(d + 2 * padding - ksize) // stride + 1 for d in (d1, d2, d3, d4)]
    taps = []
    for k1 in range(ksize):
        for k2 in range(ksize):
            for k3 in range(ksize):
                for k4 in range(ksize):
                    sl = xp[:,
                            k1:k1 + out_dims[0] * stride:stride,
                            k2:k2 + out_dims[1] * stride:stride,
                            k3:k3 + out_dims[2] * stride:stride,
                            k4:k4 + out_dims[3] * stride:stride,
                            :]
                    taps.append(sl)
    p = jnp.stack(taps, axis=-2)
    m = n * int(np.prod(out_dims))
    return p.reshape(m, ksize ** 4 * c), out_dims


def make_params(key, in_planes, planes, stride):
    ks = jax.random.split(key, 8)
    # conv weights stored tap-major, cin-minor to match im2col ordering:
    #   w[(tap*Cin + cin), cout]  ==  pytorch_w[cout, cin, k1, k2, k3, k4]
    w1 = (0.1 * jax.random.normal(ks[0], (3, 3, 3, 3, in_planes, planes),
                                  jnp.float32)).reshape(81 * in_planes, planes)
    w2 = (0.1 * jax.random.normal(ks[1], (3, 3, 3, 3, planes, planes),
                                  jnp.float32)).reshape(81 * planes, planes)
    g1 = 1.0 + 0.1 * jax.random.normal(ks[2], (1, planes), jnp.float32)
    b1 = 0.1 * jax.random.normal(ks[3], (1, planes), jnp.float32)
    g2 = 1.0 + 0.1 * jax.random.normal(ks[4], (1, planes), jnp.float32)
    b2 = 0.1 * jax.random.normal(ks[5], (1, planes), jnp.float32)
    params = dict(w1=w1, g1=g1, b1=b1, w2=w2, g2=g2, b2=b2)
    if stride != 1 or in_planes != planes:
        ws = 0.1 * jax.random.normal(ks[6], (in_planes, planes), jnp.float32)
        gs = 1.0 + 0.1 * jax.random.normal(ks[7], (1, planes), jnp.float32)
        bs = jnp.zeros((1, planes), jnp.float32)
        params.update(ws=ws, gs=gs, bs=bs)
    return params


def pack_params(raw, in_planes, planes):
    """Pad weights/BN params to lane-dense (128-multiple) shapes, cast weights
    to bf16 for the MXU; BN scale/shift stay f32."""
    cp = _round_up(planes, LANE)
    k1p = _round_up(81 * in_planes, TK)
    k2p = _round_up(81 * planes, TK)
    packed = dict(
        w1p=_pad2(raw["w1"], k1p, cp).astype(jnp.bfloat16),
        w2p=_pad2(raw["w2"], k2p, cp).astype(jnp.bfloat16),
        g1p=_pad2(raw["g1"], 1, cp),
        b1p=_pad2(raw["b1"], 1, cp),
        g2p=_pad2(raw["g2"], 1, cp),
        b2p=_pad2(raw["b2"], 1, cp),
    )
    if "ws" in raw:
        cin_p = _round_up(in_planes, LANE)
        packed["wsp"] = _pad2(raw["ws"], cin_p, cp).astype(jnp.bfloat16)
        packed["gsp"] = _pad2(raw["gs"], 1, cp)
        packed["bsp"] = _pad2(raw["bs"], 1, cp)
    return packed


# ----------------------------------------------------------------------------
# BasicBlock4d forward (Pallas) and pure-jnp references.
# ----------------------------------------------------------------------------
def basic_block4d_forward(x_cl, packed, in_planes, planes, stride=1):
    """x_cl: (N, D1..D4, Cin) channels-last f32 -> channels-last f32 output."""
    n = x_cl.shape[0]
    has_proj = (stride != 1) or (in_planes != planes)
    cp = _round_up(planes, LANE)

    # conv1 -> bn1 -> relu
    x_bf = x_cl.astype(jnp.bfloat16)
    p1, out_dims = im2col4d(x_bf, 3, stride, 1)
    m = p1.shape[0]
    mp = _round_up(m, TM)
    p1 = _pad2(p1, mp, _round_up(p1.shape[1], TK))
    h1, st1 = conv_matmul_stats(p1, packed["w1p"])
    out1 = bn_epilogue(h1, st1, packed["g1p"], packed["b1p"], m,
                       out_dtype=jnp.bfloat16)

    # conv2 patches from the activated (bf16) conv1 output
    out1_sp = out1[:m, :planes].reshape((n, *out_dims, planes))
    p2, _ = im2col4d(out1_sp, 3, 1, 1)
    p2 = _pad2(p2, mp, _round_up(p2.shape[1], TK))

    if has_proj:
        cin_p = _round_up(in_planes, LANE)
        xs = x_bf[:, ::stride, ::stride, ::stride, ::stride, :]
        xs = _pad2(xs.reshape(-1, in_planes), mp, cin_p)
        h2, st2 = conv_matmul_stats(p2, packed["w2p"],
                                    shortcut=(xs, packed["wsp"]))
        out = bn_epilogue(h2, st2, packed["g2p"], packed["b2p"], m,
                          proj=(xs, packed["wsp"], packed["gsp"],
                                packed["bsp"]),
                          out_dtype=jnp.float32)
    else:
        res = _pad2(x_cl.reshape(-1, in_planes), mp, cp)
        h2, st2 = conv_matmul_stats(p2, packed["w2p"])
        out = bn_epilogue(h2, st2, packed["g2p"], packed["b2p"], m,
                          residual=res, out_dtype=jnp.float32)

    return out[:m, :planes].astype(jnp.float32).reshape((n, *out_dims, planes))


def _ref_conv_bn(p, w, g, b, relu):
    h = p @ w
    mean = h.mean(0, keepdims=True)
    var = ((h - mean) ** 2).mean(0, keepdims=True)
    y = (h - mean) * jax.lax.rsqrt(var + EPS) * g + b
    return jnp.maximum(y, 0.0) if relu else y


def reference_forward(x_cl, raw, in_planes, planes, stride=1, cast_ops=False):
    """Pure-jnp reference. cast_ops=True mimics the kernel's bf16 matmul
    operands (and bf16 storage of the conv1 activation) with f32 accumulation;
    cast_ops=False is the plain f32 PyTorch-equivalent math."""
    c = (lambda a: a.astype(jnp.bfloat16).astype(jnp.float32)) if cast_ops \
        else (lambda a: a)
    n = x_cl.shape[0]
    p1, out_dims = im2col4d(c(x_cl), 3, stride, 1)
    out1 = c(_ref_conv_bn(c(p1), c(raw["w1"]), raw["g1"], raw["b1"], True))
    p2, _ = im2col4d(out1.reshape((n, *out_dims, planes)), 3, 1, 1)
    h2 = _ref_conv_bn(c(p2), c(raw["w2"]), raw["g2"], raw["b2"], False)
    if stride != 1 or in_planes != planes:
        xs = x_cl[:, ::stride, ::stride, ::stride, ::stride, :]
        xs = xs.reshape(-1, in_planes)
        sc = _ref_conv_bn(c(xs), c(raw["ws"]), raw["gs"], raw["bs"], False)
    else:
        sc = x_cl.reshape(-1, in_planes)
    out = jnp.maximum(h2 + sc, 0.0)
    return out.reshape((n, *out_dims, planes))


if __name__ == "__main__":
    key = jax.random.PRNGKey(0)
    configs = [
        # (N, in_planes, planes, D, stride)
        (2, 4, 8, 4, 1),   # projection shortcut (channel expansion)
        (2, 8, 8, 4, 1),   # identity shortcut
        (2, 4, 8, 4, 2),   # strided conv + projection shortcut (M padding path)
    ]
    for (n, cin, cout, d, stride) in configs:
        key, kx, kp = jax.random.split(key, 3)
        # PyTorch layout (N, C, D1..D4) -> channels-last (N, D1..D4, C)
        x_nc = jax.random.normal(kx, (n, cin, d, d, d, d), jnp.float32)
        x_cl = jnp.transpose(x_nc, (0, 2, 3, 4, 5, 1))
        raw = make_params(kp, cin, cout, stride)
        packed = pack_params(raw, cin, cout)

        out = jax.block_until_ready(
            basic_block4d_forward(x_cl, packed, cin, cout, stride))

        ref_bf = reference_forward(x_cl, raw, cin, cout, stride, cast_ops=True)
        ref_f32 = reference_forward(x_cl, raw, cin, cout, stride, cast_ops=False)

        od = (d + 2 - 3) // stride + 1
        assert out.shape == (n, od, od, od, od, cout), out.shape
        assert bool(jnp.all(jnp.isfinite(out)))
        # Tight check vs. a reference with matching (bf16-operand) numerics.
        assert bool(jnp.allclose(out, ref_bf, atol=1e-2, rtol=1e-2))
        # Looser sanity check vs. the pure-f32 PyTorch-equivalent math.
        assert bool(jnp.allclose(out, ref_f32, atol=1e-1, rtol=1e-1))
    print("KERNEL_OK")
</pallas_src>

<mosaic_0001>
module attributes {stable_mosaic.version = 11 : i64} {
  func.func @_mm_stats_kernel(%arg0: i32, %arg1: i32, %arg2: memref<256x128xbf16, #tpu.memory_space<vmem>>, %arg3: memref<128x128xbf16, #tpu.memory_space<vmem>>, %arg4: memref<256x128xf32, #tpu.memory_space<vmem>>, %arg5: memref<1x8x128xf32, #tpu.memory_space<vmem>>, %arg6: memref<256x128xf32, #tpu.memory_space<vmem>>) attributes {dimension_semantics = [#tpu.dimension_semantics<parallel>, #tpu.dimension_semantics<arbitrary>], iteration_bounds = array<i64: 2, 3>, scalar_prefetch = 0 : i64, scratch_operands = 1 : i64, tpu.core_type = #tpu.core_type<tc>, window_params = [{transform_indices = @transform_0, window_bounds = array<i64: 256, 128>}, {transform_indices = @transform_1, window_bounds = array<i64: 128, 128>}, {transform_indices = @transform_2, window_bounds = array<i64: 256, 128>}, {transform_indices = @transform_3, window_bounds = array<i64: 1, 8, 128>}]} {
    %c0_i32 = arith.constant 0 : i32
    %0 = arith.cmpi eq, %arg1, %c0_i32 : i32
    %1 = arith.extui %0 : i1 to i32
    %c0_i32_0 = arith.constant 0 : i32
    %2 = arith.cmpi ne, %1, %c0_i32_0 : i32
    scf.if %2 {
      %cst_9 = arith.constant 0.000000e+00 : f32
      %12 = vector.broadcast %cst_9 : f32 to vector<256x128xf32>
      %c0_10 = arith.constant 0 : index
      %c0_11 = arith.constant 0 : index
      %13 = vector.load %arg6[%c0_10, %c0_11] : memref<256x128xf32, #tpu.memory_space<vmem>>, vector<256x128xf32>
      tpu.vector_store %arg6[%c0_10, %c0_11], %12 {strides = array<i32>} : memref<256x128xf32, #tpu.memory_space<vmem>>, vector<256x128xf32>,
    } else {
    }
    %c0 = arith.constant 0 : index
    %c0_1 = arith.constant 0 : index
    %3 = vector.load %arg6[%c0, %c0_1] : memref<256x128xf32, #tpu.memory_space<vmem>>, vector<256x128xf32>
    %c0_2 = arith.constant 0 : index
    %c0_3 = arith.constant 0 : index
    %4 = vector.load %arg2[%c0_2, %c0_3] : memref<256x128xbf16, #tpu.memory_space<vmem>>, vector<256x128xbf16>
    %c0_4 = arith.constant 0 : index
    %c0_5 = arith.constant 0 : index
    %5 = vector.load %arg3[%c0_4, %c0_5] : memref<128x128xbf16, #tpu.memory_space<vmem>>, vector<128x128xbf16>
    %cst = arith.constant dense<0.000000e+00> : vector<256x128xf32>
    %6 = tpu.matmul %4, %5, %cst {dimension_numbers = #tpu.dot_dimension_numbers<[1], [0], [0], [1], [0, 0, 1, 1], [], []>} : vector<256x128xbf16>, vector<128x128xbf16>, vector<256x128xf32> -> vector<256x128xf32>
    %7 = arith.addf %3, %6 : vector<256x128xf32>
    %c0_6 = arith.constant 0 : index
    %c0_7 = arith.constant 0 : index
    %8 = vector.load %arg6[%c0_6, %c0_7] : memref<256x128xf32, #tpu.memory_space<vmem>>, vector<256x128xf32>
    tpu.vector_store %arg6[%c0_6, %c0_7], %7 {strides = array<i32>} : memref<256x128xf32, #tpu.memory_space<vmem>>, vector<256x128xf32>,
    %c2_i32 = arith.constant 2 : i32
    %9 = arith.cmpi eq, %arg1, %c2_i32 : i32
    %10 = arith.extui %9 : i1 to i32
    %c0_i32_8 = arith.constant 0 : i32
    %11 = arith.cmpi ne, %10, %c0_i32_8 : i32
    scf.if %11 {
      %c0_9 = arith.constant 0 : index
      %c0_10 = arith.constant 0 : index
      %12 = vector.load %arg6[%c0_9, %c0_10] : memref<256x128xf32, #tpu.memory_space<vmem>>, vector<256x128xf32>
      %c0_11 = arith.constant 0 : index
      %c0_12 = arith.constant 0 : index
      %13 = vector.load %arg4[%c0_11, %c0_12] : memref<256x128xf32, #tpu.memory_space<vmem>>, vector<256x128xf32>
      tpu.vector_store %arg4[%c0_11, %c0_12], %12 {strides = array<i32>} : memref<256x128xf32, #tpu.memory_space<vmem>>, vector<256x128xf32>,
      %cst_13 = arith.constant dense<0.000000e+00> : vector<128xf32>
      %14 = vector.multi_reduction <add>, %12, %cst_13 [0] : vector<256x128xf32> to vector<128xf32>
      %15 = vector.shape_cast %14 : vector<128xf32> to vector<1x128xf32>
      %16 = arith.mulf %12, %12 : vector<256x128xf32>
      %cst_14 = arith.constant dense<0.000000e+00> : vector<128xf32>
      %17 = vector.multi_reduction <add>, %16, %cst_14 [0] : vector<256x128xf32> to vector<128xf32>
      %18 = vector.shape_cast %17 : vector<128xf32> to vector<1x128xf32>
      %cst_15 = arith.constant 0.000000e+00 : f32
      %19 = vector.broadcast %cst_15 : f32 to vector<6x128xf32>
      %20 = tpu.concatenate %15, %18, %19 in 0 : vector<1x128xf32>, vector<1x128xf32>, vector<6x128xf32> -> vector<8x128xf32>
      %21 = vector.shape_cast %20 : vector<8x128xf32> to vector<1x8x128xf32>
      %c0_16 = arith.constant 0 : index
      %c0_17 = arith.constant 0 : index
      %c0_18 = arith.constant 0 : index
      %22 = vector.load %arg5[%c0_16, %c0_17, %c0_18] : memref<1x8x128xf32, #tpu.memory_space<vmem>>, vector<1x8x128xf32>
      tpu.vector_store %arg5[%c0_16, %c0_17, %c0_18], %21 {strides = array<i32>} : memref<1x8x128xf32, #tpu.memory_space<vmem>>, vector<1x8x128xf32>,
    } else {
    }
    return
  }
  func.func @transform_0(%arg0: i32, %arg1: i32) -> (i32, i32) {
    %c0_i32 = arith.constant 0 : i32
    return %arg0, %arg1 : i32, i32
  }
  func.func @transform_1(%arg0: i32, %arg1: i32) -> (i32, i32) {
    %c0_i32 = arith.constant 0 : i32
    %c0_i32_0 = arith.constant 0 : i32
    return %arg1, %c0_i32 : i32, i32
  }
  func.func @transform_2(%arg0: i32, %arg1: i32) -> (i32, i32) {
    %c0_i32 = arith.constant 0 : i32
    %c0_i32_0 = arith.constant 0 : i32
    return %arg0, %c0_i32 : i32, i32
  }
  func.func @transform_3(%arg0: i32, %arg1: i32) -> (i32, i32, i32) {
    %c0_i32 = arith.constant 0 : i32
    %c0_i32_0 = arith.constant 0 : i32
    %c0_i32_1 = arith.constant 0 : i32
    return %arg0, %c0_i32, %c0_i32_0 : i32, i32, i32
  }
}

</mosaic_0001>

<bundles_post_ra>
// kernel: tpu_custom_call.1
= control target key start
LH: loop header
LB: loop body
LE: loop exit
PB: predicated region body
PF: predicated region fallthrough
CT: control target
= control target key end

     0   :  { %s2199_s0 = inlined_call_operand.hbm [shape: bf16[512,384], index: 0, kind: input, shape index: {}]   ;;  %s2200_s1 = inlined_call_operand.hbm [shape: bf16[384,128], index: 1, kind: input, shape index: {}]   ;;  %s2201_s2 = inlined_call_operand.hbm [shape: f32[512,128], index: 2, kind: output, shape index: {0}]   ;;  %s2202_s3 = inlined_call_operand.hbm [shape: f32[2,8,128], index: 3, kind: output, shape index: {1}]  }
   0x1   :  { %2214 = sst [smem:[#allocation21_spill]] %s2199_s0 }
   0x2   :  { %2215 = sst [smem:[#allocation22_spill]] %s2200_s1 }
   0x3   :  { %2216 = sst [smem:[#allocation23_spill]] %s2201_s2 }
   0x4   :  { %2217 = sst [smem:[#allocation24_spill]] %s2202_s3 }
   0x5   :  { %9 = vsyncpa [#allocation4], 0 }
   0x6   :  { %11 = vsyncpa [#allocation4 + $0x1], 0 }
   0x7   :  { %12 = vsyncpa [#allocation7], 0 }
   0x8   :  { %14 = vsyncpa [#allocation7 + $0x1], 0 }
   0x9   :  { %15 = vsyncpa [#allocation5], 0 }
   0xa   :  { %17 = vsyncpa [#allocation5 + $0x1], 0 }
   0xb   :  { %18 = vsyncpa [#allocation10], 0 }
   0xc   :  { %20 = vsyncpa [#allocation10 + $0x1], 0  ;;  %s1669_s12 = smov 0   ;;  %s1671_s13 = smov 0  }
   0xd   :  { %s1673_s14 = smov 0   ;;  %s1675_s15 = smov 0  }
   0xe   :  { %s1677_s16 = smov 0   ;;  %s1679_s17 = smov 0  }
   0xf   :  { %s1681_s18 = smov 0   ;;  %s1683_s19 = smov 0  }
  0x10   :  { %s1685_s20 = smov 0   ;;  %s1687_s21 = smov 0  }
  0x11   :  { %s1689_s22 = smov 0   ;;  %s1691_s23 = smov 0  }
  0x12   :  { %s1693_s24 = smov 0   ;;  %s1695_s25 = smov 0  }
  0x13 LB: > { %2218 = sst [smem:[#allocation15_spill]] %s1625_s22  ;;  %s35_s26 = sadd.s32 1, %s1629_s23  ;;  %s1637_s25 = sphi %s1695_s25, %s26_s25   ;;  %s1633_s24 = sphi %s1693_s24, %s2246_s24   ;;  %s1629_s23 = sphi %s1691_s23, %s2245_s23   ;;  %s1625_s22 = sphi %s1689_s22, %s2244_s22   ;;  %s1621_s21 = sphi %s1687_s21, %s2243_s21   ;;  %s1617_s20 = sphi %s1685_s20, %s2255_s20   ;;  %s1613_s19 = sphi %s1683_s19, %s2254_s19   ;;  %s1609_s18 = sphi %s1681_s18, %s2253_s18   ;;  %s1605_s17 = sphi %s1679_s17, %s2252_s17   ;;  %s1601_s16 = sphi %s1677_s16, %s2251_s16   ;;  %s1597_s15 = sphi %s1675_s15, %s2250_s15   ;;  %s1593_s14 = sphi %s1673_s14, %s2249_s14   ;;  %s1589_s13 = sphi %s1671_s13, %s2248_s13   ;;  %s1585_s12 = sphi %s1669_s12, %s2247_s12  }
  0x14   : > { %2219 = sst [smem:[#allocation16_spill]] %s1629_s23  ;;  %s38_s27 = sadd.s32 1, %s1633_s24 }
  0x15   : > { %2220 = sst [smem:[#allocation17_spill]] %s1633_s24  ;;  %p36_p0 = scmp.ge.s32.totalorder %s35_s26, 3 }
  0x16   : > { %s47_s28 = sadd.s32 1, %s1617_s20  ;;  %p54_p1 = scmp.ne.s32.totalorder %s1617_s20, %s1613_s19 }
  0x17   : > { %p55_p2 = scmp.eq.s32.totalorder %s1637_s25, 0  ;;  %s2257_s26 = smov (%p36_p0, %s35_s26), 0 }
  0x18   : > { %2221 = sst [smem:[#allocation18_spill]] %s2257_s26  ;;  %s2259_s27 = smov (!%p36_p0, %s38_s27), %s1633_s24 }
  0x19   : > { %s1750_s29 = ssub.s32 %s1629_s23, %s2257_s26  ;;  %p1754_p3 = por %p55_p2, %p54_p1 }
  0x1a   : > { %p40_p4 = scmp.ge.s32.totalorder %s2259_s27, 2  ;;  %p60_p5 = scmp.ne.s32.totalorder %s1613_s19, %s1609_s18 }
  0x1b   : > { %p71_p6 = scmp.eq.s32.totalorder %s1750_s29, 0  ;;  %s99_s4 = sadd.s32 1, %s1593_s14 }
  0x1c   : > { %s2261_s27 = smov (%p40_p4, %s2259_s27), 0  ;;  %p2209_p7 = scmp.lt.s32.totalorder %s1637_s25, 6 }
  0x1d   : > { %2223 = sst [smem:[#allocation19_spill]] %s2261_s27  ;;  %s42_s5 = ssub.s32 %s1633_s24, %s2261_s27 }
  0x1e   : > { %s162_s6 = sand.u32 1, %s1617_s20   ;;  %s44_s7 = sor.u32 %s1750_s29, %s42_s5 }
  0x1f   : > { %p97_p8 = scmp.eq.s32.totalorder %s42_s5, 0  ;;  %p45_p9 = scmp.eq.s32.totalorder %s44_s7, 0 }
  0x20   : > { %s1101_s10 = sshll.u32 %s162_s6, 7  ;;  %s1236_s11 = smul.u32 96, %s1633_s24 }
  0x21   : > { %s1770_s8 = scalar_select %p97_p8, %s1593_s14, %s99_s4  }
  0x22   : > { %s1773_s9 = scalar_select %p45_p9, %s1617_s20, %s47_s28  }
  0x23   : > { %p1780_p10 = pnand %p2209_p7, %p1754_p3  ;;  %s172_s3 = sadd.s32 %s1629_s23, %s1236_s11 }
  0x24   : > { %2224 = sst [smem:[#allocation20_spill]] %s1773_s9  ;;  %s166_s27 = scalar_lea.vmem [#allocation3], %s1101_s10 }
  0x25   : > { %s175_s2 = sshll.u32 %s166_s27, 4  ;;  %s1104_s22 = sshll.u32 %s172_s3, 6  ;;  %s176_s2 = int_to_ptr.vmem [resolvable:$true] %s175_s2 }
  0x26   : > { %s2226_s0 = sld [smem:[#allocation21_spill]]  ;;  %p1108_p11 = scmp.ge.s32.totalorder %s1637_s25, 1 }
  0x27   : > { %s163_s28 = scalar_lea.sflag [#allocation4], %s162_s6  ;;  %p1405_p12 = pneg %p1780_p10 }
  0x28   : > { %s1416_s30 = scalar_lea.vmem %s176_s2, 2048  ;;  %s1639_s24 = smov [#allocation3]  }
  0x29   : > { %p1417_p13 = scmp.ne.s32.totalorder %s176_s2, %s1416_s30  ;;  %s1421_s9 = sshll.u32 %s1639_s24, 4  ;;  %s1422_s9 = int_to_ptr.vmem [resolvable:$false] %s1421_s9 }
  0x2a   : > { %s1423_s11 = scalar_lea.vmem %s1422_s9, 4096  ;;  %p1424_p3 = scmp.lt.s32.totalorder %s176_s2, %s1422_s9 }
  0x2b   : > { %p1419_p0 = pnand %p1417_p13, %p1405_p12  ;;  %p1425_p4 = scmp.lt.s32.totalorder %s1423_s11, %s1416_s30 }
  0x2c   : > { %s174_s4 = scalar_lea.hbm %s2226_s0, %s1104_s22 }
  0x2d   : > { %p1420_p1 = pneg %p1419_p0  ;;  %p1426_p8 = por %p1425_p4, %p1424_p3 }
  0x2f   : > { %p1427_p9 = pnand %p1426_p8, %p1420_p1 }
  0x31   : > { %1430 = shalt.err (!%p1427_p9)
}
  0x32   : > { %s1640_s3 = smov 192   ;;  %s2210_s22 = smov 64  }
  0x33   : > { %s2211_s24 = smov 4   ;;  %p204_p12 = scmp.lt.s32.totalorder %s1637_s25, 7 }
  0x34   : > { %1248 = dma.hbm_to_vmem [thread:$0]  (!%p1780_p10), %s174_s4, 2048, %s176_s2, %s163_s28, %s1640_s3, %s2210_s22, %s2211_s24  }
  0x35   : > { %p1798_p13 = pnand %p1108_p11, %p204_p12  ;;  %s1097_s6 = sadd.s32 4294967295, %s1637_s25  }
  0x36   : > { %s1098_s9 = sadd.s32 4294967294, %s1637_s25   ;;  %p61_p0 = scmp.eq.s32.totalorder %s1097_s6, 0 }
  0x37   : > { %s73_s10 = sadd.s32 1, %s1605_s17  ;;  %p80_p10 = scmp.ne.s32.totalorder %s1605_s17, %s1601_s16 }
  0x38   : > { %s1808_s5 = scalar_select %p71_p6, %s1605_s17, %s73_s10  }
  0x39   : > { %p1813_p1 = por %p61_p0, %p60_p5  ;;  %p86_p11 = scmp.ne.s32.totalorder %s1601_s16, %s1597_s15 }
  0x3a   : > { %p109_p3 = scmp.ne.s32.totalorder %s1593_s14, %s1589_s13  ;;  %p82_p4 = por %p80_p10, %p55_p2 }
  0x3b   : > { %p110_p8 = scmp.eq.s32.totalorder %s1097_s6, 5  ;;  %p1825_p9 = por %p86_p11, %p61_p0 }
  0x3c   : > { %p115_p12 = scmp.ne.s32.totalorder %s1589_s13, %s1585_s12  ;;  %p116_p6 = scmp.eq.s32.totalorder %s1098_s9, 5 }
  0x3d   : > { %p1831_p7 = por %p110_p8, %p109_p3  ;;  %s185_s18 = sand.u32 1, %s1605_s17  }
  0x3e   : > { %s1146_s7 = sshll.u32 %s1629_s23, 10  ;;  %p1837_p5 = por %p116_p6, %p115_p12 }
  0x3f   : > { %s1105_s15 = sshll.u32 %s185_s18, 6  ;;  %s2232_s1 = sld [smem:[#allocation22_spill]] }
  0x40   : > { %p2233_p2 = scmp.lt.s32.totalorder %s1637_s25, 6  ;;  %s189_s6 = scalar_lea.vmem [#allocation6], %s1105_s15 }
  0x41   : > { %s196_s10 = sshll.u32 %s189_s6, 4  ;;  %s186_s9 = scalar_lea.sflag [#allocation7], %s185_s18  ;;  %s197_s10 = int_to_ptr.vmem [resolvable:$true] %s196_s10 }
  0x42   : > { %p1846_p0 = pnand %p2233_p2, %p82_p4  ;;  %s1444_s22 = scalar_lea.vmem %s197_s10, 1024 }
  0x43   : > { %p1445_p11 = scmp.ne.s32.totalorder %s197_s10, %s1444_s22  ;;  %s1643_s24 = smov [#allocation6]  }
  0x44   : > { %p1433_p10 = pneg %p1846_p0  ;;  %s1449_s0 = sshll.u32 %s1643_s24, 4  ;;  %s1450_s0 = int_to_ptr.vmem [resolvable:$false] %s1449_s0 }
  0x45   : > { %s195_s11 = scalar_lea.hbm %s2232_s1, %s1146_s7  ;;  %s1451_s7 = scalar_lea.vmem %s1450_s0, 2048 }
  0x46   : > { %p1447_p3 = pnand %p1445_p11, %p1433_p10  ;;  %p1452_p12 = scmp.lt.s32.totalorder %s197_s10, %s1450_s0 }
  0x47   : > { %p1453_p4 = scmp.lt.s32.totalorder %s1451_s7, %s1444_s22 }
  0x48   : > { %p1448_p8 = pneg %p1447_p3 }
  0x49   : > { %p1454_p6 = por %p1453_p4, %p1452_p12 }
  0x4b   : > { %p1455_p2 = pnand %p1454_p6, %p1448_p8 }
  0x4d   : > { %1458 = shalt.err (!%p1455_p2)
}
  0x4e   : > { %s2235_s15 = smov 4   ;;  %s2236_s28 = smov 64  }
  0x4f   : > { %1251 = dma.hbm_to_vmem [thread:$0]  (!%p1846_p0), %s195_s11, 1024, %s197_s10, %s186_s9, %s2236_s28, %s2236_s28, %s2235_s15  }
  0x50   : > { %208 = sbr.rel (%p1798_p13) target bundleno = 503 (0x1f7), region = 28  ;;  %s210_s18 = sand.u32 (!%p1798_p13), 1, %s1613_s19  }
  0x51   : > { %s1109_s24 = sshll.u32 (!%p1798_p13), %s210_s18, 7  ;;  %s211_s30 = scalar_lea.sflag (!%p1798_p13), [#allocation4], %s210_s18 }
  0x52   : > { %s1860_s6 = scalar_lea.vmem (!%p1798_p13), [#allocation3], %s1109_s24 }
  0x55   : > { %1568 = dma.done.wait (%p1813_p1), %s211_s30, 2048  }
  0x56   : > { %1570 = vsyncadd (%p1813_p1), %s211_s30, 4294965248  ;;  %s219_s0 = sand.u32 1, %s1601_s16  }
  0x57   : > { %s1110_s22 = sshll.u32 %s219_s0, 6  ;;  %s220_s11 = scalar_lea.sflag [#allocation7], %s219_s0 }
  0x58   : > { %s1867_s3 = scalar_lea.vmem [#allocation6], %s1110_s22 }
  0x59   : > { %1572 = dma.done.wait (%p1825_p9), %s220_s11, 1024  }
  0x5a   : > { %1574 = vsyncadd (%p1825_p9), %s220_s11, 4294966272  ;;  %s1874_s27 = sand.u32 1, %s1589_s13   ;;  %p1113_p13 = scmp.ne.s32.totalorder %s1621_s21, 0 }
  0x5b   : > { %s1111_s10 = sshll.u32 %s1874_s27, 8  ;;  %s1112_s26 = sshll.u32 %s1874_s27, 3 }
  0x5c   : > { %s1878_s9 = scalar_lea.vmem [#allocation8], %s1111_s10  ;;  %s1880_s7 = scalar_lea.vmem [#allocation9], %s1112_s26 }
  0x5d   : > { %263 = sbr.rel (%p1113_p13) target bundleno = 115 (0x73), region = 40 }
  0x62   : > { %v1644_v0 = vmov 0.0  }
  0x63   : > { %264 = vst [vmem:[#allocation2 + $0xb0] sm:$0xff] %v1644_v0  ;;  %265 = vst [vmem:[#allocation2] sm:$0xff] %v1644_v0 }
  0x64   : > { %266 = vst [vmem:[#allocation2 + $0xd8] sm:$0xff] %v1644_v0  ;;  %267 = vst [vmem:[#allocation2 + $0x18] sm:$0xff] %v1644_v0 }
  0x65   : > { %268 = vst [vmem:[#allocation2 + $0x50] sm:$0xff] %v1644_v0  ;;  %269 = vst [vmem:[#allocation2 + $0x68] sm:$0xff] %v1644_v0 }
  0x66   : > { %270 = vst [vmem:[#allocation2 + $0x30] sm:$0xff] %v1644_v0  ;;  %271 = vst [vmem:[#allocation2 + $0x48] sm:$0xff] %v1644_v0 }
  0x67   : > { %272 = vst [vmem:[#allocation2 + $0x80] sm:$0xff] %v1644_v0  ;;  %273 = vst [vmem:[#allocation2 + $0x88] sm:$0xff] %v1644_v0 }
  0x68   : > { %274 = vst [vmem:[#allocation2 + $0xe8] sm:$0xff] %v1644_v0  ;;  %275 = vst [vmem:[#allocation2 + $0xb8] sm:$0xff] %v1644_v0 }
  0x69   : > { %276 = vst [vmem:[#allocation2 + $0x60] sm:$0xff] %v1644_v0  ;;  %277 = vst [vmem:[#allocation2 + $0xf0] sm:$0xff] %v1644_v0 }
  0x6a   : > { %278 = vst [vmem:[#allocation2 + $0x8] sm:$0xff] %v1644_v0  ;;  %279 = vst [vmem:[#allocation2 + $0x78] sm:$0xff] %v1644_v0 }
  0x6b   : > { %280 = vst [vmem:[#allocation2 + $0x38] sm:$0xff] %v1644_v0  ;;  %281 = vst [vmem:[#allocation2 + $0x58] sm:$0xff] %v1644_v0 }
  0x6c   : > { %282 = vst [vmem:[#allocation2 + $0x40] sm:$0xff] %v1644_v0  ;;  %283 = vst [vmem:[#allocation2 + $0xc8] sm:$0xff] %v1644_v0 }
  0x6d   : > { %284 = vst [vmem:[#allocation2 + $0xe0] sm:$0xff] %v1644_v0  ;;  %285 = vst [vmem:[#allocation2 + $0x90] sm:$0xff] %v1644_v0 }
  0x6e   : > { %286 = vst [vmem:[#allocation2 + $0x70] sm:$0xff] %v1644_v0  ;;  %287 = vst [vmem:[#allocation2 + $0xc0] sm:$0xff] %v1644_v0 }
  0x6f   : > { %288 = vst [vmem:[#allocation2 + $0xa8] sm:$0xff] %v1644_v0  ;;  %289 = vst [vmem:[#allocation2 + $0xd0] sm:$0xff] %v1644_v0 }
  0x70   : > { %290 = vst [vmem:[#allocation2 + $0x10] sm:$0xff] %v1644_v0  ;;  %291 = vst [vmem:[#allocation2 + $0x28] sm:$0xff] %v1644_v0 }
  0x71   : > { %292 = vst [vmem:[#allocation2 + $0xa0] sm:$0xff] %v1644_v0  ;;  %293 = vst [vmem:[#allocation2 + $0xf8] sm:$0xff] %v1644_v0 }
  0x72   : > { %294 = vst [vmem:[#allocation2 + $0x20] sm:$0xff] %v1644_v0  ;;  %295 = vst [vmem:[#allocation2 + $0x98] sm:$0xff] %v1644_v0 }
  0x73 PF: > { %v1379_v1 = vld [vmem:[%s1867_s3 + $0x38] sm:$0xff]   ;;  %v1380_v2 = vld [vmem:[%s1867_s3 + $0x30] sm:$0xff]   ;;  %v1381_v3 = vld [vmem:[%s1867_s3 + $0x28] sm:$0xff]   ;;  %p1138_p1 = scmp.ne.s32.totalorder %s1621_s21, 2 }
  0x74   : > { %1172 = vmatprep.subr.bf16.mxu0 %v1379_v1  ;;  %1220 = vmatprep.subr.bf16.mxu1 %v1379_v1  ;;  %v1382_v4 = vld [vmem:[%s1867_s3 + $0x20] sm:$0xff]   ;;  %v1383_v7 = vld [vmem:[%s1867_s3 + $0x18] sm:$0xff]   ;;  %v1384_v8 = vld [vmem:[%s1867_s3 + $0x10] sm:$0xff]  }
  0x75   : > { %1173 = vmatpush3.bf16.msra.mxu0 %v1379_v1  ;;  %1228 = vmatpush3.bf16.msra.mxu1 %v1379_v1  ;;  %v1387_v5 = vld [vmem:[%s1860_s6] sm:$0xff]   ;;  %v1385_v9 = vld [vmem:[%s1867_s3 + $0x8] sm:$0xff]   ;;  %v1391_v13 = vld [vmem:[%s1860_s6 + $0x10] sm:$0xff]  }
  0x76   : > { %1174 = vmatprep.subr.bf16.mxu0 %v1380_v2  ;;  %1221 = vmatprep.subr.bf16.mxu1 %v1380_v2  ;;  %v1388_v6 = vld [vmem:[%s1860_s6 + $0x40] sm:$0xff]   ;;  %v1389_v11 = vld [vmem:[%s1860_s6 + $0x8] sm:$0xff]   ;;  %v1392_v14 = vld [vmem:[%s1860_s6 + $0x50] sm:$0xff]  }
  0x77   : > { %1188 = vmatprep.mubr.bf16.mxu0 %v1387_v5  ;;  %1204 = vmatprep.mubr.bf16.mxu1 %v1388_v6  ;;  %v1386_v10 = vld [vmem:[%s1867_s3] sm:$0xff]   ;;  %v1390_v12 = vld [vmem:[%s1860_s6 + $0x48] sm:$0xff]   ;;  %v1393_v15 = vld [vmem:[%s1860_s6 + $0x18] sm:$0xff]  }
  0x78   : > { %v1394_v16 = vld [vmem:[%s1860_s6 + $0x58] sm:$0xff]   ;;  %v1395_v17 = vld [vmem:[%s1860_s6 + $0x20] sm:$0xff]   ;;  %v1397_v19 = vld [vmem:[%s1860_s6 + $0x28] sm:$0xff]  }
  0x79   : > { %1175 = vmatpush3.bf16.msra.mxu0 %v1380_v2  ;;  %1229 = vmatpush3.bf16.msra.mxu1 %v1380_v2  ;;  %v1396_v18 = vld [vmem:[%s1860_s6 + $0x60] sm:$0xff]   ;;  %v1398_v20 = vld [vmem:[%s1860_s6 + $0x68] sm:$0xff]   ;;  %v1399_v21 = vld [vmem:[%s1860_s6 + $0x30] sm:$0xff]  }
  0x7a   : > { %1176 = vmatprep.subr.bf16.mxu0 %v1381_v3  ;;  %1222 = vmatprep.subr.bf16.mxu1 %v1381_v3  ;;  %v1400_v22 = vld [vmem:[%s1860_s6 + $0x70] sm:$0xff]   ;;  %v1401_v23 = vld [vmem:[%s1860_s6 + $0x38] sm:$0xff]   ;;  %v314_v26 = vld [vmem:[#allocation2 + $0x40] sm:$0xff] }
  0x7b   : > { %v1402_v24 = vld [vmem:[%s1860_s6 + $0x78] sm:$0xff]   ;;  %v296_v29 = vld [vmem:[#allocation2 + $0xb0] sm:$0xff]  ;;  %v315_v36 = vld [vmem:[#allocation2 + $0xc8] sm:$0xff] }
  0x7c   : > { %v298_v25 = vld [vmem:[#allocation2 + $0xd8] sm:$0xff]  ;;  %v297_v41 = vld [vmem:[#allocation2] sm:$0xff]  ;;  %v302_v47 = vld [vmem:[#allocation2 + $0x30] sm:$0xff] }
  0x7d   : > { %1177 = vmatpush3.bf16.msra.mxu0 %v1381_v3  ;;  %1230 = vmatpush3.bf16.msra.mxu1 %v1381_v3  ;;  %v312_v30 = vld [vmem:[#allocation2 + $0x38] sm:$0xff]  ;;  %v318_v48 = vld [vmem:[#allocation2 + $0x70] sm:$0xff]  ;;  %v316_v54 = vld [vmem:[#allocation2 + $0xe0] sm:$0xff] }
  0x7e   : > { %1178 = vmatprep.subr.bf16.mxu0 %v1382_v4  ;;  %1223 = vmatprep.subr.bf16.mxu1 %v1382_v4  ;;  %v299_v35 = vld [vmem:[#allocation2 + $0x18] sm:$0xff]  ;;  %v300_v53 = vld [vmem:[#allocation2 + $0x50] sm:$0xff]  ;;  %v303_v59 = vld [vmem:[#allocation2 + $0x48] sm:$0xff] }
  0x7f   : > { %v313_v42 = vld [vmem:[#allocation2 + $0x58] sm:$0xff]  ;;  %v319_v60 = vld [vmem:[#allocation2 + $0xc0] sm:$0xff]  ;;  %v301_v1 = vld [vmem:[#allocation2 + $0x68] sm:$0xff] }
  0x80   : > { %v317_v2 = vld [vmem:[#allocation2 + $0x90] sm:$0xff] }
  0x81   : > { %1179 = vmatpush3.bf16.msra.mxu0 %v1382_v4  ;;  %1231 = vmatpush3.bf16.msra.mxu1 %v1382_v4 }
  0x82   : > { %1180 = vmatprep.subr.bf16.mxu0 %v1383_v7  ;;  %1224 = vmatprep.subr.bf16.mxu1 %v1383_v7 }
  0x85   : > { %1181 = vmatpush3.bf16.msra.mxu0 %v1383_v7  ;;  %1232 = vmatpush3.bf16.msra.mxu1 %v1383_v7  ;;  %v306_v7 = vld [vmem:[#allocation2 + $0xe8] sm:$0xff] }
  0x86   : > { %1182 = vmatprep.subr.bf16.mxu0 %v1384_v8  ;;  %1225 = vmatprep.subr.bf16.mxu1 %v1384_v8 }
  0x89   : > { %1183 = vmatpush3.bf16.msra.mxu0 %v1384_v8  ;;  %1233 = vmatpush3.bf16.msra.mxu1 %v1384_v8  ;;  %v322_v8 = vld [vmem:[#allocation2 + $0x10] sm:$0xff] }
  0x8a   : > { %1184 = vmatprep.subr.bf16.mxu0 %v1385_v9  ;;  %1226 = vmatprep.subr.bf16.mxu1 %v1385_v9 }
  0x8d   : > { %1185 = vmatpush3.bf16.msra.mxu0 %v1385_v9  ;;  %1234 = vmatpush3.bf16.msra.mxu1 %v1385_v9 }
  0x8e   : > { %1186 = vmatprep.subr.bf16.mxu0 %v1386_v10  ;;  %1227 = vmatprep.subr.bf16.mxu1 %v1386_v10 }
  0x91   : > { %1187 = vmatpush3.bf16.msra.mxu0 %v1386_v10  ;;  %1235 = vmatpush3.bf16.msra.mxu1 %v1386_v10 }
  0x94   : > { %1189 = vmatmul.mubr.bf16.vlgmr.msra.gmra.mxu0 %v1389_v11  ;;  %1205 = vmatmul.mubr.bf16.vlgmr.msra.gmra.mxu1 %v1390_v12 }
  0x95   : > { %1192 = vmatprep.mubr.bf16.mxu0 %v1391_v13  ;;  %1208 = vmatprep.mubr.bf16.mxu1 %v1392_v14  ;;  %v304_v13 = vld [vmem:[#allocation2 + $0x80] sm:$0xff]  ;;  %v320_v14 = vld [vmem:[#allocation2 + $0xa8] sm:$0xff] }
  0x9c   : > { %1193 = vmatmul.mubr.bf16.gmra.mxu0 %v1393_v15  ;;  %1209 = vmatmul.mubr.bf16.gmra.mxu1 %v1394_v16 }
  0x9d   : > { %1196 = vmatprep.mubr.bf16.mxu0 %v1395_v17  ;;  %1212 = vmatprep.mubr.bf16.mxu1 %v1396_v18 }
  0xa4   : > { %1197 = vmatmul.mubr.bf16.gmra.mxu0 %v1397_v19  ;;  %1213 = vmatmul.mubr.bf16.gmra.mxu1 %v1398_v20  ;;  %v307_v19 = vld [vmem:[#allocation2 + $0xb8] sm:$0xff]  ;;  %v323_v20 = vld [vmem:[#allocation2 + $0x28] sm:$0xff] }
  0xa5   : > { %1200 = vmatprep.mubr.bf16.mxu0 %v1399_v21  ;;  %1216 = vmatprep.mubr.bf16.mxu1 %v1400_v22 }
  0xac   : > { %1201 = vmatmul.mubr.bf16.gmra.mxu0 %v1401_v23  ;;  %1217 = vmatmul.mubr.bf16.gmra.mxu1 %v1402_v24 }
 0x154   : > { %v1190_v27 = vpop.f32.mrf.mxu0  ;;  %v1206_v28 = vpop.f32.mrf.mxu1 }
 0x155   : > { %v683_v31 = vadd.f32 %v1190_v27, %v298_v25  ;;  %v699_v32 = vadd.f32 %v1206_v28, %v314_v26  ;;  %v305_v25 = vld [vmem:[#allocation2 + $0x88] sm:$0xff]  ;;  %v321_v26 = vld [vmem:[#allocation2 + $0xd0] sm:$0xff] }
 0x156   : > { %v554_v33 = vpop.f32.mrf.mxu0  ;;  %v618_v34 = vpop.f32.mrf.mxu1 }
 0x157   : > { %715 = vst [vmem:[#allocation2 + $0xd8] sm:$0xff] %v683_v31  ;;  %731 = vst [vmem:[#allocation2 + $0x40] sm:$0xff] %v699_v32  ;;  %v681_v37 = vadd.f32 %v554_v33, %v296_v29  ;;  %v697_v38 = vadd.f32 %v618_v34, %v312_v30  ;;  %v310_v31 = vld [vmem:[#allocation2 + $0x8] sm:$0xff]  ;;  %v326_v32 = vld [vmem:[#allocation2 + $0x20] sm:$0xff] }
 0x158   : > { %v1191_v39 = vpop.f32.mrf.mxu0  ;;  %v1207_v40 = vpop.f32.mrf.mxu1 }
 0x159   : > { %713 = vst [vmem:[#allocation2 + $0xb0] sm:$0xff] %v681_v37  ;;  %729 = vst [vmem:[#allocation2 + $0x38] sm:$0xff] %v697_v38  ;;  %v684_v43 = vadd.f32 %v1191_v39, %v299_v35  ;;  %v700_v44 = vadd.f32 %v1207_v40, %v315_v36  ;;  %v308_v37 = vld [vmem:[#allocation2 + $0x60] sm:$0xff] }
 0x15a   : > { %v557_v45 = vpop.f32.mrf.mxu0  ;;  %v621_v46 = vpop.f32.mrf.mxu1  ;;  %v324_v38 = vld [vmem:[#allocation2 + $0xa0] sm:$0xff] }
 0x15b   : > { %716 = vst [vmem:[#allocation2 + $0x18] sm:$0xff] %v684_v43  ;;  %732 = vst [vmem:[#allocation2 + $0xc8] sm:$0xff] %v700_v44  ;;  %v682_v49 = vadd.f32 %v557_v45, %v297_v41  ;;  %v698_v50 = vadd.f32 %v621_v46, %v313_v42  ;;  %v311_v43 = vld [vmem:[#allocation2 + $0x78] sm:$0xff] }
 0x15c   : > { %v1194_v51 = vpop.f32.mrf.mxu0  ;;  %v1210_v52 = vpop.f32.mrf.mxu1  ;;  %v327_v44 = vld [vmem:[#allocation2 + $0x98] sm:$0xff] }
 0x15d   : > { %714 = vst [vmem:[#allocation2] sm:$0xff] %v682_v49  ;;  %730 = vst [vmem:[#allocation2 + $0x58] sm:$0xff] %v698_v50  ;;  %v687_v55 = vadd.f32 %v1194_v51, %v302_v47  ;;  %v703_v56 = vadd.f32 %v1210_v52, %v318_v48  ;;  %v309_v49 = vld [vmem:[#allocation2 + $0xf0] sm:$0xff]  ;;  %v325_v50 = vld [vmem:[#allocation2 + $0xf8] sm:$0xff] }
 0x15e   : > { %v570_v57 = vpop.f32.mrf.mxu0  ;;  %v634_v58 = vpop.f32.mrf.mxu1 }
 0x15f   : > { %719 = vst [vmem:[#allocation2 + $0x30] sm:$0xff] %v687_v55  ;;  %735 = vst [vmem:[#allocation2 + $0x70] sm:$0xff] %v703_v56  ;;  %v685_v61 = vadd.f32 %v570_v57, %v300_v53  ;;  %v701_v62 = vadd.f32 %v634_v58, %v316_v54 }
 0x160   : > { %v1195_v63 = vpop.f32.mrf.mxu0  ;;  %v1211_v0 = vpop.f32.mrf.mxu1 }
 0x161   : > { %717 = vst [vmem:[#allocation2 + $0x50] sm:$0xff] %v685_v61  ;;  %733 = vst [vmem:[#allocation2 + $0xe0] sm:$0xff] %v701_v62  ;;  %v688_v3 = vadd.f32 %v1195_v63, %v303_v59  ;;  %v704_v4 = vadd.f32 %v1211_v0, %v319_v60 }
 0x162   : > { %v573_v5 = vpop.f32.mrf.mxu0  ;;  %v637_v6 = vpop.f32.mrf.mxu1 }
 0x163   : > { %720 = vst [vmem:[#allocation2 + $0x48] sm:$0xff] %v688_v3  ;;  %736 = vst [vmem:[#allocation2 + $0xc0] sm:$0xff] %v704_v4  ;;  %v686_v9 = vadd.f32 %v573_v5, %v301_v1  ;;  %v702_v10 = vadd.f32 %v637_v6, %v317_v2 }
 0x164   : > { %v1198_v11 = vpop.f32.mrf.mxu0  ;;  %v1214_v12 = vpop.f32.mrf.mxu1 }
 0x165   : > { %718 = vst [vmem:[#allocation2 + $0x68] sm:$0xff] %v686_v9  ;;  %734 = vst [vmem:[#allocation2 + $0x90] sm:$0xff] %v702_v10  ;;  %v691_v15 = vadd.f32 %v1198_v11, %v306_v7  ;;  %v707_v16 = vadd.f32 %v1214_v12, %v322_v8 }
 0x166   : > { %v586_v17 = vpop.f32.mrf.mxu0  ;;  %v650_v18 = vpop.f32.mrf.mxu1 }
 0x167   : > { %723 = vst [vmem:[#allocation2 + $0xe8] sm:$0xff] %v691_v15  ;;  %739 = vst [vmem:[#allocation2 + $0x10] sm:$0xff] %v707_v16  ;;  %v689_v21 = vadd.f32 %v586_v17, %v304_v13  ;;  %v705_v22 = vadd.f32 %v650_v18, %v320_v14 }
 0x168   : > { %v1199_v23 = vpop.f32.mrf.mxu0  ;;  %v1215_v24 = vpop.f32.mrf.mxu1 }
 0x169   : > { %721 = vst [vmem:[#allocation2 + $0x80] sm:$0xff] %v689_v21  ;;  %737 = vst [vmem:[#allocation2 + $0xa8] sm:$0xff] %v705_v22  ;;  %v692_v27 = vadd.f32 %v1199_v23, %v307_v19  ;;  %v708_v28 = vadd.f32 %v1215_v24, %v323_v20 }
 0x16a   : > { %v589_v29 = vpop.f32.mrf.mxu0  ;;  %v653_v30 = vpop.f32.mrf.mxu1 }
 0x16b   : > { %724 = vst [vmem:[#allocation2 + $0xb8] sm:$0xff] %v692_v27  ;;  %740 = vst [vmem:[#allocation2 + $0x28] sm:$0xff] %v708_v28  ;;  %v690_v33 = vadd.f32 %v589_v29, %v305_v25  ;;  %v706_v34 = vadd.f32 %v653_v30, %v321_v26 }
 0x16c   : > { %v1202_v35 = vpop.f32.mrf.mxu0  ;;  %v1218_v36 = vpop.f32.mrf.mxu1 }
 0x16d   : > { %722 = vst [vmem:[#allocation2 + $0x88] sm:$0xff] %v690_v33  ;;  %738 = vst [vmem:[#allocation2 + $0xd0] sm:$0xff] %v706_v34  ;;  %v695_v39 = vadd.f32 %v1202_v35, %v310_v31  ;;  %v711_v40 = vadd.f32 %v1218_v36, %v326_v32 }
 0x16e   : > { %v602_v41 = vpop.f32.mrf.mxu0  ;;  %v666_v42 = vpop.f32.mrf.mxu1 }
 0x16f   : > { %727 = vst [vmem:[#allocation2 + $0x8] sm:$0xff] %v695_v39  ;;  %743 = vst [vmem:[#allocation2 + $0x20] sm:$0xff] %v711_v40  ;;  %v693_v45 = vadd.f32 %v602_v41, %v308_v37  ;;  %v709_v46 = vadd.f32 %v666_v42, %v324_v38 }
 0x170   : > { %v1203_v47 = vpop.f32.mrf.mxu0  ;;  %v1219_v48 = vpop.f32.mrf.mxu1 }
 0x171   : > { %725 = vst [vmem:[#allocation2 + $0x60] sm:$0xff] %v693_v45  ;;  %741 = vst [vmem:[#allocation2 + $0xa0] sm:$0xff] %v709_v46  ;;  %v696_v51 = vadd.f32 %v1203_v47, %v311_v43  ;;  %v712_v52 = vadd.f32 %v1219_v48, %v327_v44  ;;  %748 = sbr.rel (%p1138_p1) target bundleno = 454 (0x1c6), region = 44 }
 0x172   : > { %v605_v53 = vpop.f32.mrf.mxu0  ;;  %v669_v54 = vpop.f32.mrf.mxu1 }
 0x173   : > { %728 = vst [vmem:[#allocation2 + $0x78] sm:$0xff] %v696_v51  ;;  %744 = vst [vmem:[#allocation2 + $0x98] sm:$0xff] %v712_v52  ;;  %v694_v55 = vadd.f32 %v605_v53, %v309_v49  ;;  %v710_v56 = vadd.f32 %v669_v54, %v325_v50 }
 0x175   : > { %726 = vst [vmem:[#allocation2 + $0xf0] sm:$0xff] %v694_v55  ;;  %742 = vst [vmem:[#allocation2 + $0xf8] sm:$0xff] %v710_v56 }
 0x176   : > { %v749_v57 = vld [vmem:[#allocation2 + $0xb0] sm:$0xff]  ;;  %v750_v58 = vld [vmem:[#allocation2] sm:$0xff]  ;;  %v751_v59 = vld [vmem:[#allocation2 + $0xd8] sm:$0xff]  ;;  %vm919_vm0 = vcmask 1040384   ;;  %vm921_vm1 = vcmask 1041408  }
 0x177   : > { %781 = vst [vmem:[%s1878_s9] sm:$0xff] %v749_v57  ;;  %v850_v60 = vmul.f32 %v749_v57, %v749_v57  ;;  %782 = vst [vmem:[%s1878_s9 + $0x8] sm:$0xff] %v750_v58  ;;  %v813_v61 = vadd.f32 %v750_v58, %v749_v57  ;;  %v851_v62 = vmul.f32 %v750_v58, %v750_v58  ;;  %v752_v0 = vld [vmem:[#allocation2 + $0x18] sm:$0xff]  ;;  %v753_v1 = vld [vmem:[#allocation2 + $0x50] sm:$0xff] }
 0x178   : > { %783 = vst [vmem:[%s1878_s9 + $0x10] sm:$0xff] %v751_v59  ;;  %v852_v63 = vmul.f32 %v751_v59, %v751_v59  ;;  %v754_v2 = vld [vmem:[#allocation2 + $0x68] sm:$0xff]  ;;  %784 = vst [vmem:[%s1878_s9 + $0x18] sm:$0xff] %v752_v0  ;;  %v1914_v3 = vld [vmem:[#allocation2 + $0x30] sm:$0xff]  ;;  %v853_v8 = vmul.f32 %v752_v0, %v752_v0  ;;  %v854_v17 = vmul.f32 %v753_v1, %v753_v1 }
 0x179   : > { %785 = vst [vmem:[%s1878_s9 + $0x20] sm:$0xff] %v753_v1  ;;  %786 = vst [vmem:[%s1878_s9 + $0x28] sm:$0xff] %v754_v2  ;;  %v1916_v4 = vld [vmem:[#allocation2 + $0x48] sm:$0xff]  ;;  %v1918_v5 = vld [vmem:[#allocation2 + $0x80] sm:$0xff]  ;;  %v882_v6 = vadd.f32 %v851_v62, %v850_v60  ;;  %v814_v7 = vadd.f32 %v813_v61, %v751_v59  ;;  %v855_v26 = vmul.f32 %v754_v2, %v754_v2 }
 0x17a   : > { %787 = vst [vmem:[%s1878_s9 + $0x30] sm:$0xff] %v1914_v3  ;;  %788 = vst [vmem:[%s1878_s9 + $0x38] sm:$0xff] %v1916_v4  ;;  %v1926_v9 = vld [vmem:[#allocation2 + $0x88] sm:$0xff]  ;;  %v1930_v11 = vld [vmem:[#allocation2 + $0xb8] sm:$0xff]  ;;  %v856_v35 = vmul.f32 %v1914_v3, %v1914_v3  ;;  %v857_v43 = vmul.f32 %v1916_v4, %v1916_v4  ;;  %v858_v46 = vmul.f32 %v1918_v5, %v1918_v5 }
 0x17b   : > { %789 = vst [vmem:[%s1878_s9 + $0x40] sm:$0xff] %v1918_v5  ;;  %v1928_v10 = vld [vmem:[#allocation2 + $0xe8] sm:$0xff]  ;;  %790 = vst [vmem:[%s1878_s9 + $0x48] sm:$0xff] %v1926_v9  ;;  %v1938_v12 = vld [vmem:[#allocation2 + $0x60] sm:$0xff]  ;;  %v883_v15 = vadd.f32 %v882_v6, %v852_v63  ;;  %v815_v16 = vadd.f32 %v814_v7, %v752_v0  ;;  %v859_v49 = vmul.f32 %v1926_v9, %v1926_v9 }
 0x17c   : > { %791 = vst [vmem:[%s1878_s9 + $0x50] sm:$0xff] %v1928_v10  ;;  %792 = vst [vmem:[%s1878_s9 + $0x58] sm:$0xff] %v1930_v11  ;;  %v1940_v13 = vld [vmem:[#allocation2 + $0xf0] sm:$0xff]  ;;  %v1942_v14 = vld [vmem:[#allocation2 + $0x8] sm:$0xff]  ;;  %v860_v52 = vmul.f32 %v1928_v10, %v1928_v10  ;;  %v861_v55 = vmul.f32 %v1930_v11, %v1930_v11  ;;  %v862_v58 = vmul.f32 %v1938_v12, %v1938_v12 }
 0x17d   : > { %793 = vst [vmem:[%s1878_s9 + $0x60] sm:$0xff] %v1938_v12  ;;  %794 = vst [vmem:[%s1878_s9 + $0x68] sm:$0xff] %v1940_v13  ;;  %v1950_v18 = vld [vmem:[#allocation2 + $0x78] sm:$0xff]  ;;  %v1962_v21 = vld [vmem:[#allocation2 + $0x40] sm:$0xff]  ;;  %v884_v24 = vadd.f32 %v883_v15, %v853_v8  ;;  %v816_v25 = vadd.f32 %v815_v16, %v753_v1  ;;  %v863_v61 = vmul.f32 %v1940_v13, %v1940_v13 }
 0x17e   : > { %795 = vst [vmem:[%s1878_s9 + $0x70] sm:$0xff] %v1942_v14  ;;  %v1952_v19 = vld [vmem:[#allocation2 + $0x38] sm:$0xff]  ;;  %796 = vst [vmem:[%s1878_s9 + $0x78] sm:$0xff] %v1950_v18  ;;  %v1964_v22 = vld [vmem:[#allocation2 + $0xc8] sm:$0xff]  ;;  %v864_v0 = vmul.f32 %v1942_v14, %v1942_v14 }
 0x17f   : > { %v1954_v20 = vld [vmem:[#allocation2 + $0x58] sm:$0xff]  ;;  %797 = vst [vmem:[%s1878_s9 + $0x80] sm:$0xff] %v1952_v19  ;;  %v1966_v23 = vld [vmem:[#allocation2 + $0xe0] sm:$0xff]  ;;  %799 = vst [vmem:[%s1878_s9 + $0x90] sm:$0xff] %v1962_v21  ;;  %v885_v33 = vadd.f32 %v884_v24, %v854_v17  ;;  %v817_v34 = vadd.f32 %v816_v25, %v754_v2  ;;  %v866_v6 = vmul.f32 %v1952_v19, %v1952_v19 }
 0x180   : > { %798 = vst [vmem:[%s1878_s9 + $0x88] sm:$0xff] %v1954_v20  ;;  %800 = vst [vmem:[%s1878_s9 + $0x98] sm:$0xff] %v1964_v22  ;;  %v1974_v27 = vld [vmem:[#allocation2 + $0x90] sm:$0xff]  ;;  %v1978_v29 = vld [vmem:[#allocation2 + $0xc0] sm:$0xff]  ;;  %v869_v15 = vmul.f32 %v1964_v22, %v1964_v22 }
 0x181   : > { %801 = vst [vmem:[%s1878_s9 + $0xa0] sm:$0xff] %v1966_v23  ;;  %v1976_v28 = vld [vmem:[#allocation2 + $0x70] sm:$0xff]  ;;  %802 = vst [vmem:[%s1878_s9 + $0xa8] sm:$0xff] %v1974_v27  ;;  %v1986_v30 = vld [vmem:[#allocation2 + $0xa8] sm:$0xff]  ;;  %v886_v41 = vadd.f32 %v885_v33, %v855_v26  ;;  %v818_v42 = vadd.f32 %v817_v34, %v1914_v3  ;;  %v865_v3 = vmul.f32 %v1950_v18, %v1950_v18 }
 0x182   : > { %803 = vst [vmem:[%s1878_s9 + $0xb0] sm:$0xff] %v1976_v28  ;;  %804 = vst [vmem:[%s1878_s9 + $0xb8] sm:$0xff] %v1978_v29  ;;  %v1988_v31 = vld [vmem:[#allocation2 + $0xd0] sm:$0xff]  ;;  %v2000_v36 = vld [vmem:[#allocation2 + $0x28] sm:$0xff] }
 0x183   : > { %v1990_v32 = vld [vmem:[#allocation2 + $0x10] sm:$0xff]  ;;  %805 = vst [vmem:[%s1878_s9 + $0xc0] sm:$0xff] %v1986_v30  ;;  %806 = vst [vmem:[%s1878_s9 + $0xc8] sm:$0xff] %v1988_v31  ;;  %v2002_v37 = vld [vmem:[#allocation2 + $0xa0] sm:$0xff]  ;;  %v887_v44 = vadd.f32 %v886_v41, %v856_v35  ;;  %v819_v45 = vadd.f32 %v818_v42, %v1916_v4 }
 0x184   : > { %807 = vst [vmem:[%s1878_s9 + $0xd0] sm:$0xff] %v1990_v32  ;;  %v2004_v38 = vld [vmem:[#allocation2 + $0xf8] sm:$0xff]  ;;  %808 = vst [vmem:[%s1878_s9 + $0xd8] sm:$0xff] %v2000_v36  ;;  %v2012_v39 = vld [vmem:[#allocation2 + $0x20] sm:$0xff] }
 0x185   : > { %809 = vst [vmem:[%s1878_s9 + $0xe0] sm:$0xff] %v2002_v37  ;;  %810 = vst [vmem:[%s1878_s9 + $0xe8] sm:$0xff] %v2004_v38  ;;  %v2014_v40 = vld [vmem:[#allocation2 + $0x98] sm:$0xff]  ;;  %v888_v47 = vadd.f32 %v887_v44, %v857_v43  ;;  %v820_v48 = vadd.f32 %v819_v45, %v1918_v5 }
 0x186   : > { %811 = vst [vmem:[%s1878_s9 + $0xf0] sm:$0xff] %v2012_v39  ;;  %812 = vst [vmem:[%s1878_s9 + $0xf8] sm:$0xff] %v2014_v40 }
 0x187   : > { %v889_v50 = vadd.f32 %v888_v47, %v858_v46  ;;  %v821_v51 = vadd.f32 %v820_v48, %v1926_v9  ;;  %v867_v9 = vmul.f32 %v1954_v20, %v1954_v20 }
 0x189   : > { %v890_v53 = vadd.f32 %v889_v50, %v859_v49  ;;  %v822_v54 = vadd.f32 %v821_v51, %v1928_v10 }
 0x18b   : > { %v891_v56 = vadd.f32 %v890_v53, %v860_v52  ;;  %v823_v57 = vadd.f32 %v822_v54, %v1930_v11 }
 0x18d   : > { %v892_v59 = vadd.f32 %v891_v56, %v861_v55  ;;  %v824_v60 = vadd.f32 %v823_v57, %v1938_v12  ;;  %v868_v12 = vmul.f32 %v1962_v21, %v1962_v21 }
 0x18f   : > { %v893_v62 = vadd.f32 %v892_v59, %v862_v58  ;;  %v825_v63 = vadd.f32 %v824_v60, %v1940_v13 }
 0x191   : > { %v894_v1 = vadd.f32 %v893_v62, %v863_v61  ;;  %v826_v2 = vadd.f32 %v825_v63, %v1942_v14 }
 0x193   : > { %v895_v4 = vadd.f32 %v894_v1, %v864_v0  ;;  %v827_v5 = vadd.f32 %v826_v2, %v1950_v18  ;;  %v870_v18 = vmul.f32 %v1966_v23, %v1966_v23 }
 0x195   : > { %v896_v7 = vadd.f32 %v895_v4, %v865_v3  ;;  %v828_v8 = vadd.f32 %v827_v5, %v1952_v19 }
 0x197   : > { %v897_v10 = vadd.f32 %v896_v7, %v866_v6  ;;  %v829_v11 = vadd.f32 %v828_v8, %v1954_v20  ;;  %v871_v20 = vmul.f32 %v1974_v27, %v1974_v27 }
 0x199   : > { %v898_v13 = vadd.f32 %v897_v10, %v867_v9  ;;  %v830_v14 = vadd.f32 %v829_v11, %v1962_v21  ;;  %v872_v21 = vmul.f32 %v1976_v28, %v1976_v28 }
 0x19b   : > { %v899_v16 = vadd.f32 %v898_v13, %v868_v12  ;;  %v831_v17 = vadd.f32 %v830_v14, %v1964_v22  ;;  %v873_v22 = vmul.f32 %v1978_v29, %v1978_v29 }
 0x19d   : > { %v900_v19 = vadd.f32 %v899_v16, %v869_v15  ;;  %v832_v24 = vadd.f32 %v831_v17, %v1966_v23  ;;  %v874_v23 = vmul.f32 %v1986_v30, %v1986_v30 }
 0x19f   : > { %v901_v25 = vadd.f32 %v900_v19, %v870_v18  ;;  %v833_v26 = vadd.f32 %v832_v24, %v1974_v27  ;;  %v875_v27 = vmul.f32 %v1988_v31, %v1988_v31 }
 0x1a1   : > { %v902_v33 = vadd.f32 %v901_v25, %v871_v20  ;;  %v834_v34 = vadd.f32 %v833_v26, %v1976_v28  ;;  %v876_v28 = vmul.f32 %v1990_v32, %v1990_v32 }
 0x1a3   : > { %v903_v35 = vadd.f32 %v902_v33, %v872_v21  ;;  %v835_v41 = vadd.f32 %v834_v34, %v1978_v29  ;;  %v877_v29 = vmul.f32 %v2000_v36, %v2000_v36 }
 0x1a5   : > { %v904_v42 = vadd.f32 %v903_v35, %v873_v22  ;;  %v836_v43 = vadd.f32 %v835_v41, %v1986_v30  ;;  %v878_v30 = vmul.f32 %v2002_v37, %v2002_v37 }
 0x1a7   : > { %v905_v44 = vadd.f32 %v904_v42, %v874_v23  ;;  %v837_v45 = vadd.f32 %v836_v43, %v1988_v31  ;;  %v879_v31 = vmul.f32 %v2004_v38, %v2004_v38 }
 0x1a9   : > { %v906_v46 = vadd.f32 %v905_v44, %v875_v27  ;;  %v838_v47 = vadd.f32 %v837_v45, %v1990_v32  ;;  %v880_v32 = vmul.f32 %v2012_v39, %v2012_v39 }
 0x1ab   : > { %v907_v48 = vadd.f32 %v906_v46, %v876_v28  ;;  %v839_v49 = vadd.f32 %v838_v47, %v2000_v36  ;;  %v881_v36 = vmul.f32 %v2014_v40, %v2014_v40 }
 0x1ad   : > { %v908_v50 = vadd.f32 %v907_v48, %v877_v29  ;;  %v840_v51 = vadd.f32 %v839_v49, %v2002_v37 }
 0x1af   : > { %v909_v52 = vadd.f32 %v908_v50, %v878_v30  ;;  %v841_v53 = vadd.f32 %v840_v51, %v2004_v38 }
 0x1b1   : > { %v910_v54 = vadd.f32 %v909_v52, %v879_v31  ;;  %v842_v55 = vadd.f32 %v841_v53, %v2012_v39 }
 0x1b3   : > { %v911_v56 = vadd.f32 %v910_v54, %v880_v32  ;;  %v843_v57 = vadd.f32 %v842_v55, %v2014_v40 }
 0x1b5   : > { %v844_v58 = vrot.slane %v843_v57, 4  ;;  %v912_v37 = vadd.f32 %v911_v56, %v881_v36 }
 0x1b7   : > { %v845_v59 = vadd.f32 %v844_v58, %v843_v57  ;;  %v913_v60 = vrot.slane %v912_v37, 4 }
 0x1b9   : > { %v846_v61 = vrot.slane %v845_v59, 2  ;;  %v914_v62 = vadd.f32 %v913_v60, %v912_v37 }
 0x1bb   : > { %v847_v38 = vadd.f32 %v846_v61, %v845_v59  ;;  %v915_v63 = vrot.slane %v914_v62, 2 }
 0x1bd   : > { %v848_v0 = vrot.slane %v847_v38, 1  ;;  %v916_v1 = vadd.f32 %v915_v63, %v914_v62 }
 0x1bf   : > { %v849_v2 = vadd.f32 %v848_v0, %v847_v38  ;;  %v917_v3 = vrot.slane %v916_v1, 1 }
 0x1c1   : > { %v918_v39 = vadd.f32 %v917_v3, %v916_v1 }
 0x1c3   : > { %v920_v4 = vsel %vm919_vm0, %v849_v2, %v918_v39 }
 0x1c4   : > { %v922_v5 = vsel %vm921_vm1, %v920_v4, 0.0 }
 0x1c5   : > { %923 = vst [vmem:[%s1880_s7] sm:$0xff] %v922_v5 }
 0x1c6 PF: > { %s2237_s21 = sld [smem:[#allocation15_spill]]  ;;  %s943_s6 = sshll.u32 %s1878_s9, 4  ;;  %s2104_s6 = int_to_ptr.vmem [resolvable:$true] %s943_s6 }
 0x1c7   : > { %s2238_s18 = sld [smem:[#allocation23_spill]]  ;;  %s925_s0 = scalar_lea.sflag [#allocation5], %s1874_s27 }
 0x1c8   : > { %s1459_s22 = scalar_lea.vmem %s2104_s6, 4096  ;;  %s1645_s11 = smov [#allocation8]  }
 0x1c9   : > { %p1460_p9 = scmp.ne.s32.totalorder %s2104_s6, %s1459_s22  ;;  %s1463_s3 = sshll.u32 %s1645_s11, 4  ;;  %s1464_s3 = int_to_ptr.vmem [resolvable:$false] %s1463_s3 }
 0x1ca   : > { %s1465_s10 = scalar_lea.vmem %s1464_s3, 8192  ;;  %p1466_p11 = scmp.lt.s32.totalorder %s2104_s6, %s1464_s3 }
 0x1cb   : > { %p1461_p0 = pnand %p1460_p9, %p1831_p7  ;;  %p1467_p3 = scmp.lt.s32.totalorder %s1465_s10, %s1459_s22 }
 0x1cc   : > { %s1147_s2 = sshll.u32 %s2237_s21, 12 }
 0x1cd   : > { %s2239_s30 = smov %s2238_s18  ;;  %s2101_s24 = scalar_lea.hbm %s2238_s18, %s1147_s2 }
 0x1ce   : > { %p1462_p10 = pneg %p1461_p0  ;;  %p1468_p8 = por %p1467_p3, %p1466_p11 }
 0x1d0   : > { %p1469_p12 = pnand %p1468_p8, %p1462_p10 }
 0x1d2   : > { %1472 = shalt.err (!%p1469_p12)
}
 0x1d3   : > { %s1473_s26 = scalar_lea.hbm %s2101_s24, 4096  ;;  %s1477_s15 = scalar_lea.hbm %s2239_s30, 8192 }
 0x1d4   : > { %p1474_p4 = scmp.ne.s32.totalorder %s2101_s24, %s1473_s26  ;;  %p1478_p13 = scmp.lt.s32.totalorder %s2101_s24, %s2239_s30 }
 0x1d5   : > { %p1479_p1 = scmp.lt.s32.totalorder %s1477_s15, %s1473_s26 }
 0x1d6   : > { %p1475_p6 = pnand %p1474_p4, %p1831_p7 }
 0x1d7   : > { %p1480_p9 = por %p1479_p1, %p1478_p13 }
 0x1d8   : > { %p1476_p2 = pneg %p1475_p6 }
 0x1da   : > { %p1481_p0 = pnand %p1480_p9, %p1476_p2 }
 0x1dc   : > { %1484 = shalt.err (!%p1481_p0)
}
 0x1dd   : > { %s1646_s22 = smov 128   ;;  %s1647_s11 = smov 8  }
 0x1de   : > { %1241 = dma.vmem_to_hbm [thread:$0]  (%p1831_p7), %s2104_s6, 4096, %s2101_s24, %s925_s0, %s1646_s22, %s1646_s22, %s1647_s11  }
 0x1df   : > { %s1143_s3 = sshll.u32 %s2237_s21, 7  ;;  %s959_s10 = sshll.u32 %s1880_s7, 4  ;;  %s960_s10 = int_to_ptr.vmem [resolvable:$true] %s959_s10 }
 0x1e0   : > { %s2240_s2 = sld [smem:[#allocation24_spill]]  ;;  %s930_s28 = scalar_lea.sflag [#allocation10], %s1874_s27 }
 0x1e1   : > { %s1485_s18 = scalar_lea.vmem %s960_s10, 128  ;;  %s1648_s1 = smov [#allocation9]  }
 0x1e2   : > { %p1486_p10 = scmp.ne.s32.totalorder %s960_s10, %s1485_s18  ;;  %s1489_s30 = sshll.u32 %s1648_s1, 4  ;;  %s1490_s30 = int_to_ptr.vmem [resolvable:$false] %s1489_s30 }
 0x1e3   : > { %s1491_s23 = scalar_lea.vmem %s1490_s30, 256  ;;  %p1492_p8 = scmp.lt.s32.totalorder %s960_s10, %s1490_s30 }
 0x1e4   : > { %p1487_p11 = pnand %p1486_p10, %p1831_p7  ;;  %p1493_p12 = scmp.lt.s32.totalorder %s1491_s23, %s1485_s18 }
 0x1e6   : > { %s957_s15 = scalar_lea.hbm %s2240_s2, %s1143_s3  ;;  %p1488_p3 = pneg %p1487_p11 }
 0x1e7   : > { %p1494_p4 = por %p1493_p12, %p1492_p8 }
 0x1e9   : > { %p1495_p6 = pnand %p1494_p4, %p1488_p3 }
 0x1eb   : > { %1498 = shalt.err (!%p1495_p6)
}
 0x1ec   : > { %s1499_s7 = scalar_lea.hbm %s957_s15, 128  ;;  %s1503_s24 = scalar_lea.hbm %s2240_s2, 256 }
 0x1ed   : > { %p1500_p2 = scmp.ne.s32.totalorder %s957_s15, %s1499_s7  ;;  %p1504_p9 = scmp.lt.s32.totalorder %s957_s15, %s2240_s2 }
 0x1ee   : > { %p1505_p0 = scmp.lt.s32.totalorder %s1503_s24, %s1499_s7 }
 0x1ef   : > { %p1501_p13 = pnand %p1500_p2, %p1831_p7 }
 0x1f0   : > { %p1506_p10 = por %p1505_p0, %p1504_p9 }
 0x1f1   : > { %p1502_p1 = pneg %p1501_p13 }
 0x1f3   : > { %p1507_p11 = pnand %p1506_p10, %p1502_p1 }
 0x1f5   : > { %1510 = shalt.err (!%p1507_p11)
}
 0x1f6   : > { %1242 = dma.vmem_to_hbm [thread:$0]  (%p1831_p7), %s960_s10, 128, %s957_s15, %s930_s28  }
 0x1f7 PF: > { %p1260_p3 = scmp.ge.s32.totalorder %s1637_s25, 2  ;;  %s971_s1 = sand.u32 1, %s1585_s12  }
 0x1f8   : > { %s972_s23 = scalar_lea.sflag [#allocation5], %s971_s1 }
 0x1f9   : > { %p1253_p8 = pnand %p1260_p3, %p1837_p5 }
 0x1fb   : > { %p1254_p12 = pneg %p1253_p8 }
 0x1fd   : > { %1576 = dma.done.wait (%p1254_p12), %s972_s23, 4096  }
 0x1fe   : > { %1578 = vsyncadd (%p1254_p12), %s972_s23, 4294963200  ;;  %s981_s30 = scalar_lea.sflag [#allocation10], %s971_s1 }
 0x1ff   : > { %1580 = dma.done.wait (%p1254_p12), %s981_s30, 128  }
 0x200   : > { %1582 = vsyncadd (%p1254_p12), %s981_s30, 4294967168  ;;  %s26_s25 = sadd.s32 1, %s1637_s25   ;;  %s2242_s4 = sld [smem:[#allocation20_spill]] }
 0x201   : > { %p2152_p4 = scmp.ge.s32.totalorder %s26_s25, 8   ;;  %s2243_s21 = sld [smem:[#allocation16_spill]] }
 0x202   : > { %s2244_s22 = sld [smem:[#allocation17_spill]]  ;;  %s2247_s12 = smov %s1589_s13 }
 0x203   : > { %s2245_s23 = sld [smem:[#allocation18_spill]]  ;;  %s2248_s13 = smov %s1593_s14 }
 0x204   : > { %s2246_s24 = sld [smem:[#allocation19_spill]]  ;;  %s2249_s14 = smov %s1770_s8 }
 0x205   : > { %s2250_s15 = smov %s1601_s16  ;;  %s2251_s16 = smov %s1605_s17 }
 0x206   : > { %s2252_s17 = smov %s1808_s5  ;;  %s2253_s18 = smov %s1613_s19 }
 0x207   : > { %s2254_s19 = smov %s1617_s20  ;;  %s2255_s20 = smov %s2242_s4 }
 0x208   :  { %25 = sbr.rel (!%p2152_p4) target bundleno = 19 (0x13), region = 111 }
 0x20d   :  { %986 = vsyncpa [#allocation4], 1 }
 0x20e   :  { %988 = vsyncpa [#allocation4 + $0x1], 1 }
 0x20f   :  { %989 = vsyncpa [#allocation7], 1 }
 0x210   :  { %991 = vsyncpa [#allocation7 + $0x1], 1 }
 0x211   :  { %992 = vsyncpa [#allocation5], 1 }
 0x212   :  { %994 = vsyncpa [#allocation5 + $0x1], 1 }
 0x213   :  { %995 = vsyncpa [#allocation10], 1 }
 0x214   :  { %997 = vsyncpa [#allocation10 + $0x1], 1 }

</bundles_post_ra>
